<compile_context>
chip_gen: v7x
topology: tpu7x:2x2x1
jax: 0.10.0
libtpu: 0.0.40
codegen_flags: <defaults>
</compile_context>

<pallas_src>
import functools
import math

import jax
import jax.numpy as jnp
from jax import lax
from jax.experimental import pallas as pl
from jax.experimental.pallas import tpu as pltpu

HIDDEN = 32
PDROP = 0.5

# Integer-hash constants (all fit in 32 bits).
_C_ROW = 0x01000193
_C_COL = 0x27D4EB2F
_C_SEED = 0x165667B1
_C_MIX = 0x045D9F3B


def _mix32(x):
    """xorshift-multiply finalizer on uint32 (wrapping, logical shifts)."""
    m = jnp.uint32(_C_MIX)
    x = ((x >> 16) ^ x) * m
    x = ((x >> 16) ^ x) * m
    x = (x >> 16) ^ x
    return x


def dropnet_kernel(seed_ref, x_ref, w1_ref, b1_ref, w2_ref, b2_ref,
                   w3_ref, b3_ref, o_ref, *, pdrop, training):
    """Fused MLP forward on one batch tile, transposed ([features, TN]) layout."""
    hidden = w1_ref.shape[0]
    in_f, tn = x_ref.shape
    use_dropout = training and pdrop > 0.0

    # ---- fc1 + ReLU: K == 2, so skip the MXU; two VPU broadcast FMAs. ----
    xt = x_ref[...]                                   # [in_f, TN]
    w1 = w1_ref[...]                                  # [hidden, in_f]
    h = b1_ref[...] + w1[:, 0:1] * xt[0:1, :]         # [hidden, TN]
    for j in range(1, in_f):
        h = h + w1[:, j:j + 1] * xt[j:j + 1, :]
    h = jnp.maximum(h, 0.0)

    keep1 = keep2 = None
    if use_dropout:
        keep_prob = 1.0 - pdrop
        thr15 = min(int(round(keep_prob * (1 << 15))), (1 << 15) - 1)
        threshold = jnp.int32(thr15)

        # One hash per tile; both layer masks are disjoint 15-bit fields.
        # Scalar terms (seed, tile column offset) folded on the scalar unit.
        col_off = (pl.program_id(0) * tn).astype(jnp.uint32)
        base = (seed_ref[0].astype(jnp.uint32) * jnp.uint32(_C_SEED)
                + col_off * jnp.uint32(_C_COL))
        col_term = (lax.broadcasted_iota(jnp.uint32, (1, tn), 1)
                    * jnp.uint32(_C_COL) + base)                  # [1, TN]
        row_term = (lax.broadcasted_iota(jnp.uint32, (hidden, 1), 0)
                    * jnp.uint32(_C_ROW))                         # [hidden, 1]
        bits = _mix32(row_term + col_term)                        # [hidden, TN]

        low = (bits & jnp.uint32(0x7FFF)).astype(jnp.int32)
        high = ((bits >> 16) & jnp.uint32(0x7FFF)).astype(jnp.int32)
        keep1 = low < threshold
        keep2 = high < threshold

        # 1/(1-p) survivor scale is folded into w2/w3 by the wrapper, so the
        # in-kernel dropout is just a select.
        h = jnp.where(keep1, h, 0.0)

    # ---- fc2 + ReLU (+ dropout): 32x32, keep on the MXU. ----
    h = jnp.dot(w2_ref[...], h, preferred_element_type=jnp.float32) + b2_ref[...]
    h = jnp.maximum(h, 0.0)
    if use_dropout:
        h = jnp.where(keep2, h, 0.0)

    # ---- fc3 ----
    out = jnp.dot(w3_ref[...], h, preferred_element_type=jnp.float32) + b3_ref[...]
    o_ref[...] = out.astype(o_ref.dtype)


def dropnet_forward(x, params, seed, *, pdrop=PDROP, training=True,
                    tile_n=8192, x_transposed=False, return_transposed=False):
    """Forward pass.

    x: [N, 2] float32 (or [2, N] if x_transposed=True).
    params in PyTorch layout: w[out, in], b[out, 1].
    """
    w1, b1, w2, b2, w3, b3 = params
    if x_transposed:
        in_f, n = x.shape
        xt = x
    else:
        n, in_f = x.shape
        xt = x.T
    hidden = w1.shape[0]
    out_f = w3.shape[0]

    # Lane-dense batch tile: force a multiple of 128, amortize per-step
    # overhead with large tiles, but keep the grid >= 2 steps when the batch
    # allows so the "parallel" axis still shards across v7x's 2 TensorCores.
    tn = max(128, (int(tile_n) // 128) * 128)
    half = pl.cdiv(n, 2)
    tn = min(tn, max(128, pl.cdiv(half, 128) * 128))
    n_pad = pl.cdiv(n, tn) * tn

    if n_pad != n:
        xt = jnp.zeros((in_f, n_pad), x.dtype).at[:, :n].set(xt)

    # Fold the inverted-dropout survivor scale 1/(1-p) into the next layer.
    if training and pdrop > 0.0:
        inv_keep = 1.0 / (1.0 - pdrop)
        w2 = w2 * inv_keep
        w3 = w3 * inv_keep

    kernel = functools.partial(dropnet_kernel, pdrop=pdrop, training=training)

    const = lambda i: (0, 0)
    in_specs = [
        pl.BlockSpec(memory_space=pltpu.MemorySpace.SMEM),   # seed (scalar)
        pl.BlockSpec((in_f, tn), lambda i: (0, i)),          # x^T batch tile
        pl.BlockSpec((hidden, in_f), const),                 # w1
        pl.BlockSpec((hidden, 1), const),                    # b1
        pl.BlockSpec((hidden, hidden), const),               # w2
        pl.BlockSpec((hidden, 1), const),                    # b2
        pl.BlockSpec((out_f, hidden), const),                # w3
        pl.BlockSpec((out_f, 1), const),                     # b3
    ]
    out_specs = pl.BlockSpec((out_f, tn), lambda i: (0, i))

    compiler_params = pltpu.CompilerParams(
        dimension_semantics=("parallel",),
        # Explicit so large tiles compile on v5e (16 MiB default scoped VMEM)
        # while staying well under v7x's 64 MiB physical VMEM per TC.
        vmem_limit_bytes=48 * 1024 * 1024,
    )

    yt = pl.pallas_call(
        kernel,
        out_shape=jax.ShapeDtypeStruct((out_f, n_pad), x.dtype),
        grid=(n_pad // tn,),
        in_specs=in_specs,
        out_specs=out_specs,
        compiler_params=compiler_params,
    )(jnp.asarray([seed], dtype=jnp.int32), xt, w1, b1, w2, b2, w3, b3)

    yt = yt[:, :n]
    return yt if return_transposed else yt.T


def init_linear(key, fan_in, fan_out):
    """PyTorch-nn.Linear-style init; weights kept in [out, in] layout."""
    kw, kb = jax.random.split(key)
    bound = 1.0 / math.sqrt(fan_in)
    w = jax.random.uniform(kw, (fan_out, fan_in), jnp.float32, -bound, bound)
    b = jax.random.uniform(kb, (fan_out, 1), jnp.float32, -bound, bound)
    return w, b


def init_dropnet_params(key, hidden=HIDDEN):
    k1, k2, k3 = jax.random.split(key, 3)
    w1, b1 = init_linear(k1, 2, hidden)
    w2, b2 = init_linear(k2, hidden, hidden)
    w3, b3 = init_linear(k3, hidden, 2)
    return (w1, b1, w2, b2, w3, b3)


def _reference_eval(x, params):
    w1, b1, w2, b2, w3, b3 = params
    h = jnp.maximum(x @ w1.T + b1.T, 0.0)
    h = jnp.maximum(h @ w2.T + b2.T, 0.0)
    return h @ w3.T + b3.T


if __name__ == "__main__":
    key = jax.random.PRNGKey(0)
    kparam, kx, kx2 = jax.random.split(key, 3)

    params = init_dropnet_params(kparam, hidden=HIDDEN)

    # Small shape consistent with the module (fc1 expects 2 input features).
    batch = 8
    x = jax.random.normal(kx, (batch, 2), dtype=jnp.float32)

    # Training-mode forward (dropout active; 1/(1-p) folded into w2/w3).
    y_train = dropnet_forward(x, params, seed=1234, pdrop=PDROP, training=True)
    y_train = jax.block_until_ready(y_train)

    # Eval-mode forward (dropout = identity), checked against pure JAX.
    y_eval = dropnet_forward(x, params, seed=0, pdrop=PDROP, training=False)
    y_eval = jax.block_until_ready(y_eval)
    y_ref = _reference_eval(x, params)

    assert y_train.shape == (batch, 2)
    assert bool(jnp.all(jnp.isfinite(y_train)))
    assert jnp.allclose(y_eval, y_ref, atol=1e-5, rtol=1e-5)

    # Second eval-mode check exercising grid > 1, batch padding and col_off.
    batch2 = 300
    x2 = jax.random.normal(kx2, (batch2, 2), dtype=jnp.float32)
    y2 = dropnet_forward(x2, params, seed=0, pdrop=PDROP, training=False)
    y2 = jax.block_until_ready(y2)
    assert y2.shape == (batch2, 2)
    assert jnp.allclose(y2, _reference_eval(x2, params), atol=1e-5, rtol=1e-5)

    print("KERNEL_OK")
</pallas_src>

<mosaic_0001>
module attributes {stable_mosaic.version = 11 : i64} {
  func.func @dropnet_kernel(%arg0: i32, %arg1: memref<1xi32, #tpu.memory_space<smem>>, %arg2: memref<2x128xf32, #tpu.memory_space<vmem>>, %arg3: memref<32x2xf32, #tpu.memory_space<vmem>>, %arg4: memref<32x1xf32, #tpu.memory_space<vmem>>, %arg5: memref<32x32xf32, #tpu.memory_space<vmem>>, %arg6: memref<32x1xf32, #tpu.memory_space<vmem>>, %arg7: memref<2x32xf32, #tpu.memory_space<vmem>>, %arg8: memref<2x1xf32, #tpu.memory_space<vmem>>, %arg9: memref<2x128xf32, #tpu.memory_space<vmem>>) attributes {dimension_semantics = [#tpu.dimension_semantics<parallel>], iteration_bounds = array<i64: 1>, scalar_prefetch = 0 : i64, scratch_operands = 0 : i64, tpu.core_type = #tpu.core_type<tc>, window_params = [{transform_indices = @transform_0, window_bounds = array<i64: 1>}, {transform_indices = @transform_1, window_bounds = array<i64: 2, 128>}, {pipeline_mode = #tpu.pipeline_mode<synchronous>, transform_indices = @transform_2, window_bounds = array<i64: 32, 2>}, {pipeline_mode = #tpu.pipeline_mode<synchronous>, transform_indices = @transform_3, window_bounds = array<i64: 32, 1>}, {pipeline_mode = #tpu.pipeline_mode<synchronous>, transform_indices = @transform_4, window_bounds = array<i64: 32, 32>}, {pipeline_mode = #tpu.pipeline_mode<synchronous>, transform_indices = @transform_5, window_bounds = array<i64: 32, 1>}, {pipeline_mode = #tpu.pipeline_mode<synchronous>, transform_indices = @transform_6, window_bounds = array<i64: 2, 32>}, {pipeline_mode = #tpu.pipeline_mode<synchronous>, transform_indices = @transform_7, window_bounds = array<i64: 2, 1>}, {transform_indices = @transform_8, window_bounds = array<i64: 2, 128>}]} {
    %c0 = arith.constant 0 : index
    %c0_0 = arith.constant 0 : index
    %0 = vector.load %arg2[%c0, %c0_0] : memref<2x128xf32, #tpu.memory_space<vmem>>, vector<2x128xf32>
    %c0_1 = arith.constant 0 : index
    %c0_2 = arith.constant 0 : index
    %1 = vector.load %arg3[%c0_1, %c0_2] : memref<32x2xf32, #tpu.memory_space<vmem>>, vector<32x2xf32>
    %c0_3 = arith.constant 0 : index
    %c0_4 = arith.constant 0 : index
    %2 = vector.load %arg4[%c0_3, %c0_4] : memref<32x1xf32, #tpu.memory_space<vmem>>, vector<32x1xf32>
    %3 = vector.extract_strided_slice %1 {offsets = [0, 0], sizes = [32, 1], strides = [1, 1]} : vector<32x2xf32> to vector<32x1xf32>
    %4 = vector.extract_strided_slice %0 {offsets = [0, 0], sizes = [1, 128], strides = [1, 1]} : vector<2x128xf32> to vector<1x128xf32>
    %5 = vector.broadcast %3 : vector<32x1xf32> to vector<32x128xf32>
    %6 = vector.broadcast %4 : vector<1x128xf32> to vector<32x128xf32>
    %7 = arith.mulf %5, %6 : vector<32x128xf32>
    %8 = vector.broadcast %2 : vector<32x1xf32> to vector<32x128xf32>
    %9 = arith.addf %8, %7 : vector<32x128xf32>
    %10 = vector.extract_strided_slice %1 {offsets = [0, 1], sizes = [32, 1], strides = [1, 1]} : vector<32x2xf32> to vector<32x1xf32>
    %11 = vector.extract_strided_slice %0 {offsets = [1, 0], sizes = [1, 128], strides = [1, 1]} : vector<2x128xf32> to vector<1x128xf32>
    %12 = vector.broadcast %10 : vector<32x1xf32> to vector<32x128xf32>
    %13 = vector.broadcast %11 : vector<1x128xf32> to vector<32x128xf32>
    %14 = arith.mulf %12, %13 : vector<32x128xf32>
    %15 = arith.addf %9, %14 : vector<32x128xf32>
    %cst = arith.constant 0.000000e+00 : f32
    %16 = vector.broadcast %cst : f32 to vector<32x128xf32>
    %17 = arith.maximumf %15, %16 : vector<32x128xf32>
    %c128_i32 = arith.constant 128 : i32
    %18 = arith.muli %arg0, %c128_i32 : i32
    %c0_5 = arith.constant 0 : index
    %19 = memref.load %arg1[%c0_5] : memref<1xi32, #tpu.memory_space<smem>>
    %c374761393_i32 = arith.constant 374761393 : i32
    %20 = arith.muli %19, %c374761393_i32 : i32
    %c668265263_i32 = arith.constant 668265263 : i32
    %21 = arith.muli %18, %c668265263_i32 : i32
    %22 = arith.addi %20, %21 : i32
    %23 = tpu.iota {dimensions = array<i32: 1>} : vector<1x128xi32>
    %c668265263_i32_6 = arith.constant 668265263 : i32
    %24 = vector.broadcast %c668265263_i32_6 : i32 to vector<1x128xi32>
    %25 = arith.muli %23, %24 : vector<1x128xi32>
    %26 = vector.broadcast %22 : i32 to vector<1x128xi32>
    %27 = arith.addi %25, %26 : vector<1x128xi32>
    %28 = tpu.iota {dimensions = array<i32: 0>} : vector<32x1xi32>
    %c16777619_i32 = arith.constant 16777619 : i32
    %29 = vector.broadcast %c16777619_i32 : i32 to vector<32x1xi32>
    %30 = arith.muli %28, %29 : vector<32x1xi32>
    %31 = vector.broadcast %30 : vector<32x1xi32> to vector<32x128xi32>
    %32 = vector.broadcast %27 : vector<1x128xi32> to vector<32x128xi32>
    %33 = arith.addi %31, %32 : vector<32x128xi32>
    %c16_i32 = arith.constant 16 : i32
    %34 = vector.broadcast %c16_i32 : i32 to vector<32x128xi32>
    %35 = arith.shrui %33, %34 : vector<32x128xi32>
    %36 = arith.xori %35, %33 : vector<32x128xi32>
    %c73244475_i32 = arith.constant 73244475 : i32
    %37 = vector.broadcast %c73244475_i32 : i32 to vector<32x128xi32>
    %38 = arith.muli %36, %37 : vector<32x128xi32>
    %c16_i32_7 = arith.constant 16 : i32
    %39 = vector.broadcast %c16_i32_7 : i32 to vector<32x128xi32>
    %40 = arith.shrui %38, %39 : vector<32x128xi32>
    %41 = arith.xori %40, %38 : vector<32x128xi32>
    %c73244475_i32_8 = arith.constant 73244475 : i32
    %42 = vector.broadcast %c73244475_i32_8 : i32 to vector<32x128xi32>
    %43 = arith.muli %41, %42 : vector<32x128xi32>
    %c16_i32_9 = arith.constant 16 : i32
    %44 = vector.broadcast %c16_i32_9 : i32 to vector<32x128xi32>
    %45 = arith.shrui %43, %44 : vector<32x128xi32>
    %46 = arith.xori %45, %43 : vector<32x128xi32>
    %c32767_i32 = arith.constant 32767 : i32
    %47 = vector.broadcast %c32767_i32 : i32 to vector<32x128xi32>
    %48 = arith.andi %46, %47 : vector<32x128xi32>
    %c16_i32_10 = arith.constant 16 : i32
    %49 = vector.broadcast %c16_i32_10 : i32 to vector<32x128xi32>
    %50 = arith.shrui %46, %49 : vector<32x128xi32>
    %c32767_i32_11 = arith.constant 32767 : i32
    %51 = vector.broadcast %c32767_i32_11 : i32 to vector<32x128xi32>
    %52 = arith.andi %50, %51 : vector<32x128xi32>
    %c16384_i32 = arith.constant 16384 : i32
    %53 = vector.broadcast %c16384_i32 : i32 to vector<32x128xi32>
    %54 = arith.cmpi slt, %48, %53 : vector<32x128xi32>
    %c16384_i32_12 = arith.constant 16384 : i32
    %55 = vector.broadcast %c16384_i32_12 : i32 to vector<32x128xi32>
    %56 = arith.cmpi slt, %52, %55 : vector<32x128xi32>
    %cst_13 = arith.constant 0.000000e+00 : f32
    %57 = vector.broadcast %cst_13 : f32 to vector<32x128xf32>
    %58 = arith.select %54, %17, %57 : vector<32x128xi1>, vector<32x128xf32>
    %c0_14 = arith.constant 0 : index
    %c0_15 = arith.constant 0 : index
    %59 = vector.load %arg5[%c0_14, %c0_15] : memref<32x32xf32, #tpu.memory_space<vmem>>, vector<32x32xf32>
    %cst_16 = arith.constant dense<0.000000e+00> : vector<32x128xf32>
    %60 = tpu.matmul %59, %58, %cst_16 {dimension_numbers = #tpu.dot_dimension_numbers<[1], [0], [0], [1], [0, 0, 1, 1], [], []>} : vector<32x32xf32>, vector<32x128xf32>, vector<32x128xf32> -> vector<32x128xf32>
    %c0_17 = arith.constant 0 : index
    %c0_18 = arith.constant 0 : index
    %61 = vector.load %arg6[%c0_17, %c0_18] : memref<32x1xf32, #tpu.memory_space<vmem>>, vector<32x1xf32>
    %62 = vector.broadcast %61 : vector<32x1xf32> to vector<32x128xf32>
    %63 = arith.addf %60, %62 : vector<32x128xf32>
    %cst_19 = arith.constant 0.000000e+00 : f32
    %64 = vector.broadcast %cst_19 : f32 to vector<32x128xf32>
    %65 = arith.maximumf %63, %64 : vector<32x128xf32>
    %cst_20 = arith.constant 0.000000e+00 : f32
    %66 = vector.broadcast %cst_20 : f32 to vector<32x128xf32>
    %67 = arith.select %56, %65, %66 : vector<32x128xi1>, vector<32x128xf32>
    %c0_21 = arith.constant 0 : index
    %c0_22 = arith.constant 0 : index
    %68 = vector.load %arg7[%c0_21, %c0_22] : memref<2x32xf32, #tpu.memory_space<vmem>>, vector<2x32xf32>
    %cst_23 = arith.constant dense<0.000000e+00> : vector<2x128xf32>
    %69 = tpu.matmul %68, %67, %cst_23 {dimension_numbers = #tpu.dot_dimension_numbers<[1], [0], [0], [1], [0, 0, 1, 1], [], []>} : vector<2x32xf32>, vector<32x128xf32>, vector<2x128xf32> -> vector<2x128xf32>
    %c0_24 = arith.constant 0 : index
    %c0_25 = arith.constant 0 : index
    %70 = vector.load %arg8[%c0_24, %c0_25] : memref<2x1xf32, #tpu.memory_space<vmem>>, vector<2x1xf32>
    %71 = vector.broadcast %70 : vector<2x1xf32> to vector<2x128xf32>
    %72 = arith.addf %69, %71 : vector<2x128xf32>
    %c0_26 = arith.constant 0 : index
    %c0_27 = arith.constant 0 : index
    %73 = vector.load %arg9[%c0_26, %c0_27] : memref<2x128xf32, #tpu.memory_space<vmem>>, vector<2x128xf32>
    tpu.vector_store %arg9[%c0_26, %c0_27], %72 {strides = array<i32>} : memref<2x128xf32, #tpu.memory_space<vmem>>, vector<2x128xf32>,
    return
  }
  func.func @transform_0(%arg0: i32) -> i32 {
    %c0_i32 = arith.constant 0 : i32
    %c0_i32_0 = arith.constant 0 : i32
    return %c0_i32 : i32
  }
  func.func @transform_1(%arg0: i32) -> (i32, i32) {
    %c0_i32 = arith.constant 0 : i32
    %c0_i32_0 = arith.constant 0 : i32
    return %c0_i32, %arg0 : i32, i32
  }
  func.func @transform_2(%arg0: i32) -> (i32, i32) {
    %c0_i32 = arith.constant 0 : i32
    %c0_i32_0 = arith.constant 0 : i32
    %c0_i32_1 = arith.constant 0 : i32
    return %c0_i32, %c0_i32_0 : i32, i32
  }
  func.func @transform_3(%arg0: i32) -> (i32, i32) {
    %c0_i32 = arith.constant 0 : i32
    %c0_i32_0 = arith.constant 0 : i32
    %c0_i32_1 = arith.constant 0 : i32
    return %c0_i32, %c0_i32_0 : i32, i32
  }
  func.func @transform_4(%arg0: i32) -> (i32, i32) {
    %c0_i32 = arith.constant 0 : i32
    %c0_i32_0 = arith.constant 0 : i32
    %c0_i32_1 = arith.constant 0 : i32
    return %c0_i32, %c0_i32_0 : i32, i32
  }
  func.func @transform_5(%arg0: i32) -> (i32, i32) {
    %c0_i32 = arith.constant 0 : i32
    %c0_i32_0 = arith.constant 0 : i32
    %c0_i32_1 = arith.constant 0 : i32
    return %c0_i32, %c0_i32_0 : i32, i32
  }
  func.func @transform_6(%arg0: i32) -> (i32, i32) {
    %c0_i32 = arith.constant 0 : i32
    %c0_i32_0 = arith.constant 0 : i32
    %c0_i32_1 = arith.constant 0 : i32
    return %c0_i32, %c0_i32_0 : i32, i32
  }
  func.func @transform_7(%arg0: i32) -> (i32, i32) {
    %c0_i32 = arith.constant 0 : i32
    %c0_i32_0 = arith.constant 0 : i32
    %c0_i32_1 = arith.constant 0 : i32
    return %c0_i32, %c0_i32_0 : i32, i32
  }
  func.func @transform_8(%arg0: i32) -> (i32, i32) {
    %c0_i32 = arith.constant 0 : i32
    %c0_i32_0 = arith.constant 0 : i32
    return %c0_i32, %arg0 : i32, i32
  }
}

</mosaic_0001>

<bundles_post_ra>
// kernel: tpu_custom_call.1
= control target key start
LH: loop header
LB: loop body
LE: loop exit
PB: predicated region body
PF: predicated region fallthrough
CT: control target
= control target key end

     0   :  { %v540_v2 = vmov 0   ;;  %s682_s0 = inlined_call_operand.<no memory space> [shape: s32[1], index: 0, kind: input, shape index: {}]   ;;  %s683_s1 = inlined_call_operand.vmem [shape: f32[2,128], index: 1, kind: input, shape index: {}]   ;;  %s684_s2 = inlined_call_operand.vmem [shape: f32[32,2], index: 2, kind: input, shape index: {}]   ;;  %s685_s3 = inlined_call_operand.vmem [shape: f32[32,1], index: 3, kind: input, shape index: {}]   ;;  %s686_s4 = inlined_call_operand.vmem [shape: f32[32,32], index: 4, kind: input, shape index: {}]   ;;  %s687_s5 = inlined_call_operand.vmem [shape: f32[32,1], index: 5, kind: input, shape index: {}]   ;;  %s688_s6 = inlined_call_operand.vmem [shape: f32[2,32], index: 6, kind: input, shape index: {}]   ;;  %s689_s7 = inlined_call_operand.vmem [shape: f32[2,1], index: 7, kind: input, shape index: {}]   ;;  %s690_s8 = inlined_call_operand.hbm [shape: f32[2,128], index: 8, kind: output, shape index: {}]  }
   0x1   :  { %v36_v0 = vld [vmem:[%s685_s3] sm:$0xff]  ;;  %509 = vset.pattern.permute.xlu1 %v540_v2  ;;  %508 = vset.pattern.permute.xlu0 %v540_v2  ;;  %v37_v3 = vld [vmem:[%s685_s3 + $0x8] sm:$0xff] }
   0x2   :  { %v32_v1 = vld [vmem:[%s684_s2] sm:$0xff]  ;;  %70 = vperm.xlu1 %509, %v36_v0   ;;  %v33_v4 = vld [vmem:[%s684_s2 + $0x8] sm:$0xff] }
   0x3   :  { %42 = vperm.xlu0 %508, %v32_v1  }
   0x4   :  { %14 = vsyncpa [#allocation4], 0  ;;  %v35_v5 = vld [vmem:[%s684_s2 + $0x18] sm:$0xff]  ;;  %v541_v6 = vmov 1   ;;  %v34_v7 = vld [vmem:[%s684_s2 + $0x10] sm:$0xff]  ;;  %vm230_vm0 = vcmask 261120   ;;  %v60_v16 = vlaneseq }
   0x5   :  { %v38_v8 = vld [vmem:[%s685_s3 + $0x10] sm:$0xff]  ;;  %v39_v9 = vld [vmem:[%s685_s3 + $0x18] sm:$0xff]  ;;  %v202_v10 = vld [vmem:[%s686_s4] sm:$0xff]  ;;  %s125_s11 = smul.u32 374761393, %s682_s0  ;;  %vm543_vm7 = vmmov 0  }
   0x6   :  { %75 = vperm.xlu1 %509, %v37_v3   ;;  %465 = vmatprep.mubr.msk.f32.mxu0 %vm230_vm0, %v202_v10  ;;  %v206_v11 = vld [vmem:[%s687_s5] sm:$0xff]  ;;  %v207_v12 = vld [vmem:[%s687_s5 + $0x8] sm:$0xff]  ;;  %v208_v13 = vld [vmem:[%s687_s5 + $0x10] sm:$0xff]  ;;  %v61_v17 = vshrl.u32 %v60_v16, 7  ;;  %v129_v18 = vand.u32 127, %v60_v16  ;;  %s545_s17 = smov [#allocation3]  }
   0x7   :  { %47 = vperm.xlu0 %508, %v33_v4   ;;  %v337_v14 = vld [vmem:[%s689_s7] sm:$0x3]  ;;  %v209_v15 = vld [vmem:[%s687_s5 + $0x18] sm:$0xff]  ;;  %v131_v21 = vstv %s125_s11  ;;  %s423_s18 = sshll.u32 %s545_s17, 4  ;;  %s424_s18 = int_to_ptr.vmem [resolvable:$true] %s423_s18 }
   0x8   :  { %v130_v19 = vmul.u32 668265263, %v129_v18  ;;  %v135_v20 = vadd.s32 8, %v61_v17  ;;  %v138_v23 = vmul.u32 16777619, %v61_v17  ;;  %v136_v29 = vadd.s32 16, %v61_v17  ;;  %p521_p1 = scmp.lt.s32.totalorder %s424_s18, %s424_s18 }
   0x9   :  { %v137_v30 = vadd.s32 24, %v61_v17  ;;  %v62_v52 = vsub.s32 0, %v61_v17  ;;  %v110_v53 = vsub.s32 1, %v61_v17  ;;  %v31_v55 = vld [vmem:[%s683_s1] sm:$0x3]  ;;  %s516_s19 = scalar_lea.vmem %s424_s18, 32 }
   0xa   :  { %510 = vset.pattern.permute.xlu1 %v541_v6  ;;  %v132_v22 = vadd.s32 %v131_v21, %v130_v19  ;;  %v139_v24 = vmul.u32 16777619, %v135_v20  ;;  %v140_v33 = vmul.u32 16777619, %v136_v29  ;;  %p517_p0 = scmp.ne.s32.totalorder %s424_s18, %s516_s19  ;;  %p522_p2 = scmp.lt.s32.totalorder %s516_s19, %s516_s19 }
   0xb   :  { %57 = vperm.xlu0 %508, %v35_v5   ;;  %97 = vperm.xlu1 %510, %v33_v4   ;;  %v141_v34 = vmul.u32 16777619, %v137_v30  ;;  %v63_v61 = vrot.slane %v31_v55, %v62_v52  ;;  %v111_v62 = vrot.slane %v31_v55, %v110_v53 }
   0xc   :  { %v142_v25 = vadd.s32 %v138_v23, %v132_v22  ;;  %v143_v26 = vadd.s32 %v139_v24, %v132_v22  ;;  %v144_v37 = vadd.s32 %v140_v33, %v132_v22  ;;  %p523_p3 = por %p522_p2, %p521_p1 }
   0xd   :  { %v145_v38 = vadd.s32 %v141_v34, %v132_v22 }
   0xe   :  { %v146_v27 = vshrl.u32 %v142_v25, 16  ;;  %v147_v28 = vshrl.u32 %v143_v26, 16  ;;  %v148_v41 = vshrl.u32 %v144_v37, 16  ;;  %p524_p4 = pnand %p523_p3, %p517_p0 }
   0xf   :  { %512 = vset.pattern.permute.xlu0 %v541_v6  ;;  %511 = vset.pattern.permute.xlu1 %v540_v2  ;;  %v149_v42 = vshrl.u32 %v145_v38, 16 }
  0x10   :  { %93 = vperm.xlu0 %512, %v32_v1   ;;  %52 = vperm.xlu1 %511, %v34_v7   ;;  %v150_v31 = vxor.u32 %v146_v27, %v142_v25  ;;  %v151_v32 = vxor.u32 %v147_v28, %v143_v26  ;;  %v152_v45 = vxor.u32 %v148_v41, %v144_v37 }
  0x11   :  { %v153_v46 = vxor.u32 %v149_v42, %v145_v38 }
  0x12   :  { %v154_v35 = vmul.u32 73244475, %v150_v31  ;;  %v155_v36 = vmul.u32 73244475, %v151_v32 }
  0x13   :  { %v156_v51 = vmul.u32 73244475, %v152_v45  ;;  %v157_v54 = vmul.u32 73244475, %v153_v46  ;;  %v203_v45 = vld [vmem:[%s686_s4 + $0x8] sm:$0xff]  ;;  %v204_v46 = vld [vmem:[%s686_s4 + $0x10] sm:$0xff] }
  0x14   :  { %101 = vperm.xlu0 %512, %v34_v7   ;;  %80 = vperm.xlu1 %511, %v38_v8   ;;  %v158_v39 = vshrl.u32 %v154_v35, 16  ;;  %v159_v40 = vshrl.u32 %v155_v36, 16 }
  0x15   :  { %v160_v60 = vshrl.u32 %v156_v51, 16  ;;  %v161_v63 = vshrl.u32 %v157_v54, 16 }
  0x16   :  { %v162_v43 = vxor.u32 %v158_v39, %v154_v35  ;;  %v163_v44 = vxor.u32 %v159_v40, %v155_v36 }
  0x17   :  { %v165_v8 = vxor.u32 %v161_v63, %v157_v54 }
  0x18   :  { %515 = vset.pattern.permute.xlu0 %v540_v2  ;;  %85 = vperm.xlu1 %511, %v39_v9   ;;  %v166_v49 = vmul.u32 73244475, %v162_v43  ;;  %v167_v50 = vmul.u32 73244475, %v163_v44 }
  0x19   :  { %217 = vperm.xlu0 %515, %v207_v12   ;;  %v169_v18 = vmul.u32 73244475, %v165_v8 }
  0x1a   :  { %v170_v58 = vshrl.u32 %v166_v49, 16  ;;  %v171_v59 = vshrl.u32 %v167_v50, 16 }
  0x1b   :  { %v173_v25 = vshrl.u32 %v169_v18, 16 }
  0x1c   :  { %513 = vset.pattern.permute.xlu1 %v541_v6  ;;  %v642_v3 = vxor.u32 %v171_v59, %v167_v50 }
  0x1d   :  { %105 = vperm.xlu1 %513, %v35_v5   ;;  %340 = vperm.xlu0 %515, %v337_v14   ;;  %v164_v5 = vxor.u32 %v160_v60, %v156_v51  ;;  %v177_v31 = vxor.u32 %v173_v25, %v169_v18 }
  0x1e   :  { %v183_v52 = vshrl.u32 %v642_v3, 16 }
  0x1f   :  { %v181_v36 = vand.u32 32767, %v177_v31 }
  0x20   :  { %v187_v55 = vand.u32 32767, %v183_v52 }
  0x21   :  { %514 = vset.pattern.permute.xlu1 %v540_v2  ;;  %v640_v2 = vxor.u32 %v170_v58, %v166_v49  ;;  %vm193_vm5 = vcmp.lt.s32.totalorder %v181_v36, 16384  ;;  %v544_v49 = vmov 0.0  }
  0x22   :  { %212 = vperm.xlu1 %514, %v206_v11   ;;  %v179_v11 = vand.u32 32767, %v642_v3  ;;  %479 = vmatprep.mubr.msk.f32.mxu1 %vm543_vm7, %v544_v49  ;;  %vm195_vm9 = vcmp.lt.s32.totalorder %v187_v55, 16384 }
  0x23   :  { %v178_v10 = vand.u32 32767, %v640_v2  ;;  %v182_v51 = vshrl.u32 %v640_v2, 16 }
  0x24   :  { %vm191_vm2 = vcmp.lt.s32.totalorder %v179_v11, 16384 }
  0x25   :  { %vm646_vm1 = vcmp.lt.s32.totalorder %v178_v10, 16384  ;;  %v186_v53 = vand.u32 32767, %v182_v51 }
  0x26   :  { %222 = vperm.xlu1 %514, %v208_v13   ;;  %v168_v13 = vmul.u32 73244475, %v164_v5  ;;  %vm483_vm3 = vmpackc.low %vm191_vm2, %vm646_vm1 }
  0x27   :  { %vm194_vm8 = vcmp.lt.s32.totalorder %v186_v53, 16384 }
  0x28   :  { %v172_v24 = vshrl.u32 %v168_v13, 16  ;;  %vm496_vm10 = vmpackc.low %vm195_vm9, %vm194_vm8 }
  0x2a   :  { %227 = vperm.xlu1 %514, %v209_v15   ;;  %v176_v30 = vxor.u32 %v172_v24, %v168_v13 }
  0x2c   :  { %v180_v35 = vand.u32 32767, %v176_v30 }
  0x2e   :  { %vm192_vm4 = vcmp.lt.s32.totalorder %v180_v35, 16384 }
  0x2f   :  { %vm489_vm6 = vmpackc.low %vm193_vm5, %vm192_vm4 }
  0x81   :  { %v71_v47 = vpop.permute.xlu1 %70 }
  0x82   :  { %v43_v48 = vpop.permute.xlu0 %42 }
  0x83   :  { %v64_v6 = vmul.f32 %v63_v61, %v43_v48  ;;  %v542_v48 = vmov 0.0|0.0  }
  0x84   :  { %494 = vmatprep.subr.bf16.mxu1 %v542_v48 }
  0x85   :  { %v76_v56 = vpop.permute.xlu1 %75  ;;  %v88_v14 = vadd.f32 %v71_v47, %v64_v6  ;;  %v205_v47 = vld [vmem:[%s686_s4 + $0x18] sm:$0xff] }
  0x86   :  { %v48_v57 = vpop.permute.xlu0 %47 }
  0x87   :  { %v65_v0 = vmul.f32 %v63_v61, %v48_v57  ;;  %v185_v57 = vshrl.u32 %v177_v31, 16 }
  0x89   :  { %v89_v9 = vadd.f32 %v76_v56, %v65_v0  ;;  %v184_v56 = vshrl.u32 %v176_v30, 16  ;;  %v189_v0 = vand.u32 32767, %v185_v57 }
  0x8a   :  { %v58_v1 = vpop.permute.xlu0 %57  ;;  %v98_v4 = vpop.permute.xlu1 %97 }
  0x8b   :  { %v113_v7 = vmul.f32 %v111_v62, %v98_v4  ;;  %v67_v34 = vmul.f32 %v63_v61, %v58_v1  ;;  %v188_v63 = vand.u32 32767, %v184_v56  ;;  %vm197_vm12 = vcmp.lt.s32.totalorder %v189_v0, 16384 }
  0x8d   :  { %v117_v15 = vadd.f32 %v113_v7, %v89_v9  ;;  %vm196_vm11 = vcmp.lt.s32.totalorder %v188_v63, 16384 }
  0x8e   :  { %vm500_vm13 = vmpackc.low %vm197_vm12, %vm196_vm11 }
  0x8f   :  { %v94_v12 = vpop.permute.xlu0 %93  ;;  %v53_v17 = vpop.permute.xlu1 %52  ;;  %v121_v21 = vmax.f32 %v117_v15, 0.0 }
  0x90   :  { %v112_v16 = vmul.f32 %v111_v62, %v94_v12  ;;  %v66_v28 = vmul.f32 %v63_v61, %v53_v17  ;;  %v336_v12 = vld [vmem:[%s688_s6] sm:$0x3] }
  0x92   :  { %v116_v19 = vadd.f32 %v112_v16, %v88_v14 }
  0x93   :  { %v81_v23 = vpop.permute.xlu1 %80  ;;  %v102_v27 = vpop.permute.xlu0 %101 }
  0x94   :  { %v120_v22 = vmax.f32 %v116_v19, 0.0  ;;  %v90_v32 = vadd.f32 %v81_v23, %v66_v28  ;;  %v114_v33 = vmul.f32 %v111_v62, %v102_v27 }
  0x96   :  { %v482_v26 = vpack.c.bf16 %v121_v21, %v120_v22  ;;  %v118_v38 = vadd.f32 %v114_v33, %v90_v32 }
  0x97   :  { %v86_v29 = vpop.permute.xlu1 %85 }
  0x98   :  { %484 = vmatprep.subr.msk.bf16.mxu0 %vm483_vm3, %v482_v26  ;;  %v91_v39 = vadd.f32 %v86_v29, %v67_v34  ;;  %v122_v42 = vmax.f32 %v118_v38, 0.0  ;;  %v218_v58 = vpop.permute.xlu0 %217 }
  0x99   :  { %487 = vmatpush3.bf16.msk.msra.mxu0 %vm483_vm3, %v482_v26 }
  0x9c   :  { %v106_v37 = vpop.permute.xlu1 %105  ;;  %v341_v13 = vpop.permute.xlu0 %340 }
  0x9d   :  { %v115_v40 = vmul.f32 %v111_v62, %v106_v37 }
  0x9f   :  { %v119_v41 = vadd.f32 %v115_v40, %v91_v39 }
  0xa1   :  { %v123_v43 = vmax.f32 %v119_v41, 0.0  ;;  %v213_v50 = vpop.permute.xlu1 %212 }
  0xa3   :  { %v488_v44 = vpack.c.bf16 %v123_v43, %v122_v42 }
  0xa5   :  { %490 = vmatprep.subr.msk.bf16.mxu0 %vm489_vm6, %v488_v44  ;;  %v223_v54 = vpop.permute.xlu1 %222 }
  0xa6   :  { %493 = vmatpush3.bf16.msk.msra.mxu0 %vm489_vm6, %v488_v44 }
  0xa9   :  { %466 = vmatmul.mubr.msk.f32.vlgmr.msra.gmra.mrb[0].mxu0 %vm230_vm0, %v203_v45  ;;  %v228_v4 = vpop.permute.xlu1 %227 }
  0xaa   :  { %468 = vmatprep.mubr.msk.f32.mxu0 %vm230_vm0, %v204_v46 }
  0xad   :  { %469 = vmatmul.mubr.msk.f32.gmra.mrb[2].mxu0 %vm230_vm0, %v205_v47 }
 0x17c   :  { %v467_v59 = vpop.f32.mrb[0].mxu0 }
 0x17d   :  { %v315_v60 = vadd.f32 %v467_v59, %v218_v58  ;;  %v309_v61 = vpop.f32.mrb[1].mxu0 }
 0x17e   :  { %v310_v62 = vadd.f32 %v309_v61, %v213_v50 }
 0x17f   :  { %v329_v1 = vmax.f32 %v315_v60, 0.0 }
 0x180   :  { %v328_v5 = vmax.f32 %v310_v62, 0.0  ;;  %v470_v2 = vpop.f32.mrb[2].mxu0 }
 0x181   :  { %v325_v6 = vadd.f32 %v470_v2, %v228_v4  ;;  %v319_v3 = vpop.f32.mrb[3].mxu0 }
 0x182   :  { %v495_v7 = vpack.c.bf16 %v329_v1, %v328_v5  ;;  %v320_v8 = vadd.f32 %v319_v3, %v223_v54 }
 0x183   :  { %v331_v9 = vmax.f32 %v325_v6, 0.0 }
 0x184   :  { %v330_v10 = vmax.f32 %v320_v8, 0.0  ;;  %497 = vmatpush3.bf16.msk.msra.mxu1 %vm496_vm10, %v495_v7 }
 0x185   :  { %498 = vmatprep.subr.bf16.mxu1 %v542_v48 }
 0x186   :  { %v499_v11 = vpack.c.bf16 %v331_v9, %v330_v10 }
 0x188   :  { %501 = vmatpush3.bf16.msk.msra.mxu1 %vm500_vm13, %v499_v11 }
 0x18b   :  { %480 = vmatmul.mubr.msk.f32.vlgmr.msra.gmra.mrb[0].mxu1 %vm230_vm0, %v336_v12 }
 0x25e   :  { %v412_v14 = vpop.f32.mrb[0].mxu1 }
 0x25f   :  { %v413_v15 = vadd.f32 %v412_v14, %v341_v13  ;;  %v481_v16 = vpop.f32.mrb[1].mxu1 }
 0x261   :  { %416 = vst [vmem:[#allocation3] sm:$0x3] %v413_v15 }
 0x262   :  { %527 = shalt.err (!%p524_p4)
}
 0x263   :  { %s528_s6 = scalar_lea.hbm %s690_s8, 32 }
 0x264   :  { %p529_p5 = scmp.ne.s32.totalorder %s690_s8, %s528_s6  ;;  %p532_p6 = scmp.lt.u32.totalorder %s528_s6, %s690_s8 }
 0x266   :  { %p534_p7 = pnand %p532_p6, %p529_p5 }
 0x268   :  { %537 = shalt.err (!%p534_p7)
}
 0x269   :  { %426 = dma.vmem_to_hbm [thread:$0]  %s424_s18, 32, %s690_s8, [#allocation4]  }
 0x26a   :  { %538 = dma.done.wait [#allocation4], 32  }
 0x26b   :  { %539 = vsyncadd [#allocation4], 4294967264 }
 0x26c   :  { %430 = vsyncpa [#allocation4], 1 }

</bundles_post_ra>
